<compile_context>
chip_gen: v7x
topology: tpu7x:2x2x1
jax: 0.10.0
libtpu: 0.0.40
codegen_flags: <defaults>
</compile_context>

<pallas_src>
import functools

import jax
import jax.numpy as jnp
from jax.experimental import pallas as pl
from jax.experimental.pallas import tpu as pltpu


def _round_up(x, m):
    return (x + m - 1) // m * m


def _fmlp_kernel(n_layers, n_output, w_dtype,
                 x_ref, bflat_ref, r_ref, b2n_ref, w0_ref, b0_ref,
                 wh_ref, bh_ref, wo_ref, bo_ref, o_ref):
    """Fused forward pass for one batch tile.

    x_ref     : (TB, n_input)            streamed activation tile
    bflat_ref : (n_input, H*L)           beta[m,l,j]/sqrt(2) laid out as [j, m*L+l]
    r_ref     : (H*L, H)                 0/1 latent-reduction matrix
    b2n_ref   : (n_input, H)             -0.5 * sum_l beta[m,l,j]^2
    w0_ref    : (n_input, H)   b0_ref: (1, H)
    wh_ref    : (n_layers, H, H)         bh_ref: (n_layers, 1, H)
    wo_ref    : (1, H) if n_output==1 else (H, n_output);   bo_ref: (1, n_output)
    o_ref     : (TB, n_output)
    """
    x = x_ref[...].astype(jnp.float32)                      # (TB, n_in)
    xw = x.astype(w_dtype)
    x2 = (x * x).astype(w_dtype)                            # square on VPU in f32

    # FM low-rank identity (the 1/2 and -1/2 are pre-folded into bflat / b2n).
    t = jnp.dot(xw, bflat_ref[...], preferred_element_type=jnp.float32)   # (TB, H*L)
    t2 = (t * t).astype(w_dtype)
    fi = jnp.dot(t2, r_ref[...], preferred_element_type=jnp.float32)      # (TB, H)
    fi = fi + jnp.dot(x2, b2n_ref[...], preferred_element_type=jnp.float32)

    lin = jnp.dot(xw, w0_ref[...], preferred_element_type=jnp.float32)
    h = jnp.maximum(fi + lin + b0_ref[...], 0.0)

    for l in range(n_layers):                               # small static unroll
        h = jnp.maximum(
            jnp.dot(h.astype(w_dtype), wh_ref[l],
                    preferred_element_type=jnp.float32) + bh_ref[l], 0.0)

    if n_output == 1:
        # VPU broadcast-multiply + lane reduction (XLU slot); writes a lane-1 block
        # instead of a 128-lane padded matmul result.
        out = jnp.sum(h * wo_ref[...], axis=-1, keepdims=True) + bo_ref[...]
    else:
        out = jnp.dot(h.astype(w_dtype), wo_ref[...],
                      preferred_element_type=jnp.float32) + bo_ref[...]
    o_ref[...] = out.astype(o_ref.dtype)


def mlp_forward(x, params, *, n_layers, block_batch=2048,
                compute_dtype=jnp.bfloat16):
    """JAX wrapper: batch-independent weight preprocessing + one gridded pallas_call."""
    beta = params["beta"]          # (H, n_latent, n_input)
    w0 = params["w0"]              # (n_input, H)
    b0 = params["b0"]              # (H,)
    wh = params["wh"]              # (n_layers, H, H)
    bh = params["bh"]              # (n_layers, H)
    wo = params["wo"]              # (H, n_output)
    bo = params["bo"]              # (n_output,)

    B, n_input = x.shape
    H, L, _ = beta.shape
    n_output = wo.shape[1]
    HL = H * L
    w_dtype = compute_dtype

    # ---- weight preprocessing (tiny, batch-independent glue) -------------------
    beta_f = beta.astype(jnp.float32)
    # bflat[j, m*L + l] = beta[m, l, j] / sqrt(2)  (folds the FM 1/2 into the square)
    bflat = (jnp.transpose(beta_f, (2, 0, 1)).reshape(n_input, HL)
             * (2.0 ** -0.5)).astype(w_dtype)
    # Latent-reduction matrix: r[m*L + l, m'] = 1[m == m']  (exact in bf16).
    r = jnp.repeat(jnp.eye(H, dtype=jnp.float32), L, axis=0).astype(w_dtype)
    # Diagonal correction: b2n[j, m] = -0.5 * sum_l beta[m, l, j]^2.
    b2n = (-0.5 * jnp.sum(beta_f * beta_f, axis=1).T).astype(w_dtype)

    w0_k = w0.astype(w_dtype)
    b0_k = b0.reshape(1, H).astype(jnp.float32)
    if n_layers > 0:
        wh_k = wh.astype(w_dtype)
        bh_k = bh.reshape(n_layers, 1, H).astype(jnp.float32)
    else:
        wh_k = jnp.zeros((1, H, H), w_dtype)
        bh_k = jnp.zeros((1, 1, H), jnp.float32)

    if n_output == 1:
        wo_k = wo.reshape(1, H).astype(jnp.float32)      # VPU row, kept f32
    else:
        wo_k = wo.astype(w_dtype)
    bo_k = bo.reshape(1, n_output).astype(jnp.float32)

    # ---- batch tiling: >= 2 grid steps when possible (v7x has 2 TensorCores) ----
    if B <= 16:
        tb = B                                        # one tile == full (tiny) batch
    else:
        tb = max(8, min(block_batch, _round_up(pl.cdiv(B, 2), 8)))
    num_tiles = pl.cdiv(B, tb)

    def _resident(*shape):
        zeros = (0,) * len(shape)
        return pl.BlockSpec(shape, lambda i, z=zeros: z)

    itemsize = jnp.dtype(w_dtype).itemsize
    flops = 2 * B * (n_input * HL + HL * H + 2 * n_input * H
                     + n_layers * H * H + H * n_output)
    bytes_accessed = (4 * B * (n_input + n_output)
                      + itemsize * (bflat.size + r.size + b2n.size
                                    + w0_k.size + wh_k.size)
                      + 4 * (b0_k.size + bh_k.size + wo_k.size + bo_k.size))

    kernel = functools.partial(_fmlp_kernel, n_layers, n_output, w_dtype)
    out = pl.pallas_call(
        kernel,
        out_shape=jax.ShapeDtypeStruct((B, n_output), jnp.float32),
        grid=(num_tiles,),
        in_specs=[
            pl.BlockSpec((tb, n_input), lambda i: (i, 0)),   # x tile (streamed)
            _resident(n_input, HL),                          # bflat      (resident)
            _resident(HL, H),                                # latent-red (resident)
            _resident(n_input, H),                           # b2n        (resident)
            _resident(n_input, H),                           # w0         (resident)
            _resident(1, H),                                 # b0         (resident)
            _resident(max(n_layers, 1), H, H),               # wh         (resident)
            _resident(max(n_layers, 1), 1, H),               # bh         (resident)
            _resident(*wo_k.shape),                          # wo         (resident)
            _resident(1, n_output),                          # bo         (resident)
        ],
        out_specs=pl.BlockSpec((tb, n_output), lambda i: (i, 0)),
        compiler_params=pltpu.CompilerParams(
            dimension_semantics=("parallel",)),
        cost_estimate=pl.CostEstimate(
            flops=flops, transcendentals=0, bytes_accessed=bytes_accessed),
    )(x.astype(jnp.float32), bflat, r, b2n, w0_k, b0_k, wh_k, bh_k, wo_k, bo_k)

    return out


def mlp_reference(x, params, *, n_layers):
    """Pure-JAX reference mirroring the PyTorch forward exactly."""
    beta = params["beta"]
    n_input = x.shape[1]
    c = jnp.einsum("mlj,mlk->mjk", beta, beta)
    mask = jnp.triu(jnp.ones((n_input, n_input), jnp.float32), k=1)
    fi = jnp.einsum("ij,ik,mjk,jk->im", x, x, c, mask)
    h = jax.nn.relu(fi + x @ params["w0"] + params["b0"])
    for l in range(n_layers):
        h = jax.nn.relu(h @ params["wh"][l] + params["bh"][l])
    return h @ params["wo"] + params["bo"]


def init_params(key, n_input, n_hidden, n_layers, n_output=1, n_latent=8):
    ks = jax.random.split(key, 8)

    def lin_init(kw, kb, fan_in, fan_out):
        bound = 1.0 / jnp.sqrt(fan_in)
        w = jax.random.uniform(kw, (fan_in, fan_out), jnp.float32, -bound, bound)
        b = jax.random.uniform(kb, (fan_out,), jnp.float32, -bound, bound)
        return w, b

    beta = jax.random.uniform(ks[0], (n_hidden, n_latent, n_input), jnp.float32)
    w0, b0 = lin_init(ks[1], ks[2], n_input, n_hidden)
    whs, bhs = [], []
    kh = jax.random.split(ks[3], 2 * n_layers)
    for l in range(n_layers):
        w, b = lin_init(kh[2 * l], kh[2 * l + 1], n_hidden, n_hidden)
        whs.append(w)
        bhs.append(b)
    wo, bo = lin_init(ks[4], ks[5], n_hidden, n_output)
    return {
        "beta": beta,
        "w0": w0, "b0": b0,
        "wh": jnp.stack(whs), "bh": jnp.stack(bhs),
        "wo": wo, "bo": bo,
    }


if __name__ == "__main__":
    N_INPUT, N_HIDDEN, N_LAYERS, N_OUTPUT, N_LATENT = 16, 32, 2, 1, 8

    key = jax.random.PRNGKey(0)
    kx, kp = jax.random.split(key)
    params = init_params(kp, N_INPUT, N_HIDDEN, N_LAYERS, N_OUTPUT, N_LATENT)
    x = jax.random.normal(kx, (64, N_INPUT), jnp.float32)

    # 1) f32 path, batch divides the tile -> tight check against the reference.
    out = jax.block_until_ready(
        mlp_forward(x, params, n_layers=N_LAYERS, compute_dtype=jnp.float32))
    ref = mlp_reference(x, params, n_layers=N_LAYERS)
    assert out.shape == (64, N_OUTPUT), out.shape
    assert jnp.allclose(out, ref, rtol=1e-4, atol=1e-4), (
        f"f32 max abs err {jnp.max(jnp.abs(out - ref))}")

    # 2) f32 path with a ragged batch (exercises the partial final grid tile).
    xr = x[:20]
    out_r = jax.block_until_ready(
        mlp_forward(xr, params, n_layers=N_LAYERS, compute_dtype=jnp.float32))
    ref_r = mlp_reference(xr, params, n_layers=N_LAYERS)
    assert jnp.allclose(out_r, ref_r, rtol=1e-4, atol=1e-4), (
        f"ragged max abs err {jnp.max(jnp.abs(out_r - ref_r))}")

    # 3) default bf16-weight path (perf configuration) -> loose relative check.
    out_bf = jax.block_until_ready(mlp_forward(x, params, n_layers=N_LAYERS))
    rel = jnp.linalg.norm(out_bf - ref) / jnp.linalg.norm(ref)
    assert rel < 0.1, f"bf16 relative L2 error {rel}"

    print("KERNEL_OK")
</pallas_src>

<mosaic_0001>
module attributes {stable_mosaic.version = 11 : i64} {
  func.func @_fmlp_kernel(%arg0: i32, %arg1: memref<32x16xf32, #tpu.memory_space<vmem>>, %arg2: memref<16x256xf32, #tpu.memory_space<vmem>>, %arg3: memref<256x32xf32, #tpu.memory_space<vmem>>, %arg4: memref<16x32xf32, #tpu.memory_space<vmem>>, %arg5: memref<16x32xf32, #tpu.memory_space<vmem>>, %arg6: memref<1x32xf32, #tpu.memory_space<vmem>>, %arg7: memref<2x32x32xf32, #tpu.memory_space<vmem>>, %arg8: memref<2x1x32xf32, #tpu.memory_space<vmem>>, %arg9: memref<1x32xf32, #tpu.memory_space<vmem>>, %arg10: memref<1x1xf32, #tpu.memory_space<vmem>>, %arg11: memref<32x1xf32, #tpu.memory_space<vmem>>) attributes {dimension_semantics = [#tpu.dimension_semantics<parallel>], iteration_bounds = array<i64: 2>, scalar_prefetch = 0 : i64, scratch_operands = 0 : i64, tpu.core_type = #tpu.core_type<tc>, window_params = [{transform_indices = @transform_0, window_bounds = array<i64: 32, 16>}, {pipeline_mode = #tpu.pipeline_mode<synchronous>, transform_indices = @transform_1, window_bounds = array<i64: 16, 256>}, {pipeline_mode = #tpu.pipeline_mode<synchronous>, transform_indices = @transform_2, window_bounds = array<i64: 256, 32>}, {pipeline_mode = #tpu.pipeline_mode<synchronous>, transform_indices = @transform_3, window_bounds = array<i64: 16, 32>}, {pipeline_mode = #tpu.pipeline_mode<synchronous>, transform_indices = @transform_4, window_bounds = array<i64: 16, 32>}, {pipeline_mode = #tpu.pipeline_mode<synchronous>, transform_indices = @transform_5, window_bounds = array<i64: 1, 32>}, {pipeline_mode = #tpu.pipeline_mode<synchronous>, transform_indices = @transform_6, window_bounds = array<i64: 2, 32, 32>}, {pipeline_mode = #tpu.pipeline_mode<synchronous>, transform_indices = @transform_7, window_bounds = array<i64: 2, 1, 32>}, {pipeline_mode = #tpu.pipeline_mode<synchronous>, transform_indices = @transform_8, window_bounds = array<i64: 1, 32>}, {pipeline_mode = #tpu.pipeline_mode<synchronous>, transform_indices = @transform_9, window_bounds = array<i64: 1, 1>}, {transform_indices = @transform_10, window_bounds = array<i64: 32, 1>}]} {
    %c0 = arith.constant 0 : index
    %c0_0 = arith.constant 0 : index
    %0 = vector.load %arg1[%c0, %c0_0] : memref<32x16xf32, #tpu.memory_space<vmem>>, vector<32x16xf32>
    %1 = arith.mulf %0, %0 : vector<32x16xf32>
    %c0_1 = arith.constant 0 : index
    %c0_2 = arith.constant 0 : index
    %2 = vector.load %arg2[%c0_1, %c0_2] : memref<16x256xf32, #tpu.memory_space<vmem>>, vector<16x256xf32>
    %cst = arith.constant dense<0.000000e+00> : vector<32x256xf32>
    %3 = tpu.matmul %0, %2, %cst {dimension_numbers = #tpu.dot_dimension_numbers<[1], [0], [0], [1], [0, 0, 1, 1], [], []>} : vector<32x16xf32>, vector<16x256xf32>, vector<32x256xf32> -> vector<32x256xf32>
    %4 = arith.mulf %3, %3 : vector<32x256xf32>
    %c0_3 = arith.constant 0 : index
    %c0_4 = arith.constant 0 : index
    %5 = vector.load %arg3[%c0_3, %c0_4] : memref<256x32xf32, #tpu.memory_space<vmem>>, vector<256x32xf32>
    %cst_5 = arith.constant dense<0.000000e+00> : vector<32x32xf32>
    %6 = tpu.matmul %4, %5, %cst_5 {dimension_numbers = #tpu.dot_dimension_numbers<[1], [0], [0], [1], [0, 0, 1, 1], [], []>} : vector<32x256xf32>, vector<256x32xf32>, vector<32x32xf32> -> vector<32x32xf32>
    %c0_6 = arith.constant 0 : index
    %c0_7 = arith.constant 0 : index
    %7 = vector.load %arg4[%c0_6, %c0_7] : memref<16x32xf32, #tpu.memory_space<vmem>>, vector<16x32xf32>
    %cst_8 = arith.constant dense<0.000000e+00> : vector<32x32xf32>
    %8 = tpu.matmul %1, %7, %cst_8 {dimension_numbers = #tpu.dot_dimension_numbers<[1], [0], [0], [1], [0, 0, 1, 1], [], []>} : vector<32x16xf32>, vector<16x32xf32>, vector<32x32xf32> -> vector<32x32xf32>
    %9 = arith.addf %6, %8 : vector<32x32xf32>
    %c0_9 = arith.constant 0 : index
    %c0_10 = arith.constant 0 : index
    %10 = vector.load %arg5[%c0_9, %c0_10] : memref<16x32xf32, #tpu.memory_space<vmem>>, vector<16x32xf32>
    %cst_11 = arith.constant dense<0.000000e+00> : vector<32x32xf32>
    %11 = tpu.matmul %0, %10, %cst_11 {dimension_numbers = #tpu.dot_dimension_numbers<[1], [0], [0], [1], [0, 0, 1, 1], [], []>} : vector<32x16xf32>, vector<16x32xf32>, vector<32x32xf32> -> vector<32x32xf32>
    %12 = arith.addf %9, %11 : vector<32x32xf32>
    %c0_12 = arith.constant 0 : index
    %c0_13 = arith.constant 0 : index
    %13 = vector.load %arg6[%c0_12, %c0_13] : memref<1x32xf32, #tpu.memory_space<vmem>>, vector<1x32xf32>
    %14 = vector.broadcast %13 : vector<1x32xf32> to vector<32x32xf32>
    %15 = arith.addf %12, %14 : vector<32x32xf32>
    %cst_14 = arith.constant 0.000000e+00 : f32
    %16 = vector.broadcast %cst_14 : f32 to vector<32x32xf32>
    %17 = arith.maximumf %15, %16 : vector<32x32xf32>
    %c0_15 = arith.constant 0 : index
    %c0_16 = arith.constant 0 : index
    %c0_17 = arith.constant 0 : index
    %18 = vector.load %arg7[%c0_15, %c0_16, %c0_17] : memref<2x32x32xf32, #tpu.memory_space<vmem>>, vector<1x32x32xf32>
    %19 = vector.shape_cast %18 : vector<1x32x32xf32> to vector<32x32xf32>
    %cst_18 = arith.constant dense<0.000000e+00> : vector<32x32xf32>
    %20 = tpu.matmul %17, %19, %cst_18 {dimension_numbers = #tpu.dot_dimension_numbers<[1], [0], [0], [1], [0, 0, 1, 1], [], []>} : vector<32x32xf32>, vector<32x32xf32>, vector<32x32xf32> -> vector<32x32xf32>
    %c0_19 = arith.constant 0 : index
    %c0_20 = arith.constant 0 : index
    %c0_21 = arith.constant 0 : index
    %21 = vector.load %arg8[%c0_19, %c0_20, %c0_21] : memref<2x1x32xf32, #tpu.memory_space<vmem>>, vector<1x1x32xf32>
    %22 = vector.shape_cast %21 : vector<1x1x32xf32> to vector<1x32xf32>
    %23 = vector.broadcast %22 : vector<1x32xf32> to vector<32x32xf32>
    %24 = arith.addf %20, %23 : vector<32x32xf32>
    %cst_22 = arith.constant 0.000000e+00 : f32
    %25 = vector.broadcast %cst_22 : f32 to vector<32x32xf32>
    %26 = arith.maximumf %24, %25 : vector<32x32xf32>
    %c1 = arith.constant 1 : index
    %c0_23 = arith.constant 0 : index
    %c0_24 = arith.constant 0 : index
    %27 = vector.load %arg7[%c1, %c0_23, %c0_24] : memref<2x32x32xf32, #tpu.memory_space<vmem>>, vector<1x32x32xf32>
    %28 = vector.shape_cast %27 : vector<1x32x32xf32> to vector<32x32xf32>
    %cst_25 = arith.constant dense<0.000000e+00> : vector<32x32xf32>
    %29 = tpu.matmul %26, %28, %cst_25 {dimension_numbers = #tpu.dot_dimension_numbers<[1], [0], [0], [1], [0, 0, 1, 1], [], []>} : vector<32x32xf32>, vector<32x32xf32>, vector<32x32xf32> -> vector<32x32xf32>
    %c1_26 = arith.constant 1 : index
    %c0_27 = arith.constant 0 : index
    %c0_28 = arith.constant 0 : index
    %30 = vector.load %arg8[%c1_26, %c0_27, %c0_28] : memref<2x1x32xf32, #tpu.memory_space<vmem>>, vector<1x1x32xf32>
    %31 = vector.shape_cast %30 : vector<1x1x32xf32> to vector<1x32xf32>
    %32 = vector.broadcast %31 : vector<1x32xf32> to vector<32x32xf32>
    %33 = arith.addf %29, %32 : vector<32x32xf32>
    %cst_29 = arith.constant 0.000000e+00 : f32
    %34 = vector.broadcast %cst_29 : f32 to vector<32x32xf32>
    %35 = arith.maximumf %33, %34 : vector<32x32xf32>
    %c0_30 = arith.constant 0 : index
    %c0_31 = arith.constant 0 : index
    %36 = vector.load %arg9[%c0_30, %c0_31] : memref<1x32xf32, #tpu.memory_space<vmem>>, vector<1x32xf32>
    %37 = vector.broadcast %36 : vector<1x32xf32> to vector<32x32xf32>
    %38 = arith.mulf %35, %37 : vector<32x32xf32>
    %cst_32 = arith.constant dense<0.000000e+00> : vector<32xf32>
    %39 = vector.multi_reduction <add>, %38, %cst_32 [1] : vector<32x32xf32> to vector<32xf32>
    %40 = vector.shape_cast %39 : vector<32xf32> to vector<32x1xf32>
    %c0_33 = arith.constant 0 : index
    %c0_34 = arith.constant 0 : index
    %41 = vector.load %arg10[%c0_33, %c0_34] : memref<1x1xf32, #tpu.memory_space<vmem>>, vector<1x1xf32>
    %42 = vector.broadcast %41 : vector<1x1xf32> to vector<32x1xf32>
    %43 = arith.addf %40, %42 : vector<32x1xf32>
    %c0_35 = arith.constant 0 : index
    %c0_36 = arith.constant 0 : index
    %44 = vector.load %arg11[%c0_35, %c0_36] : memref<32x1xf32, #tpu.memory_space<vmem>>, vector<32x1xf32>
    tpu.vector_store %arg11[%c0_35, %c0_36], %43 {strides = array<i32>} : memref<32x1xf32, #tpu.memory_space<vmem>>, vector<32x1xf32>,
    return
  }
  func.func @transform_0(%arg0: i32) -> (i32, i32) {
    %c0_i32 = arith.constant 0 : i32
    %c0_i32_0 = arith.constant 0 : i32
    return %arg0, %c0_i32 : i32, i32
  }
  func.func @transform_1(%arg0: i32) -> (i32, i32) {
    %c0_i32 = arith.constant 0 : i32
    %c0_i32_0 = arith.constant 0 : i32
    %c0_i32_1 = arith.constant 0 : i32
    return %c0_i32, %c0_i32_0 : i32, i32
  }
  func.func @transform_2(%arg0: i32) -> (i32, i32) {
    %c0_i32 = arith.constant 0 : i32
    %c0_i32_0 = arith.constant 0 : i32
    %c0_i32_1 = arith.constant 0 : i32
    return %c0_i32, %c0_i32_0 : i32, i32
  }
  func.func @transform_3(%arg0: i32) -> (i32, i32) {
    %c0_i32 = arith.constant 0 : i32
    %c0_i32_0 = arith.constant 0 : i32
    %c0_i32_1 = arith.constant 0 : i32
    return %c0_i32, %c0_i32_0 : i32, i32
  }
  func.func @transform_4(%arg0: i32) -> (i32, i32) {
    %c0_i32 = arith.constant 0 : i32
    %c0_i32_0 = arith.constant 0 : i32
    %c0_i32_1 = arith.constant 0 : i32
    return %c0_i32, %c0_i32_0 : i32, i32
  }
  func.func @transform_5(%arg0: i32) -> (i32, i32) {
    %c0_i32 = arith.constant 0 : i32
    %c0_i32_0 = arith.constant 0 : i32
    %c0_i32_1 = arith.constant 0 : i32
    return %c0_i32, %c0_i32_0 : i32, i32
  }
  func.func @transform_6(%arg0: i32) -> (i32, i32, i32) {
    %c0_i32 = arith.constant 0 : i32
    %c0_i32_0 = arith.constant 0 : i32
    %c0_i32_1 = arith.constant 0 : i32
    %c0_i32_2 = arith.constant 0 : i32
    return %c0_i32, %c0_i32_0, %c0_i32_1 : i32, i32, i32
  }
  func.func @transform_7(%arg0: i32) -> (i32, i32, i32) {
    %c0_i32 = arith.constant 0 : i32
    %c0_i32_0 = arith.constant 0 : i32
    %c0_i32_1 = arith.constant 0 : i32
    %c0_i32_2 = arith.constant 0 : i32
    return %c0_i32, %c0_i32_0, %c0_i32_1 : i32, i32, i32
  }
  func.func @transform_8(%arg0: i32) -> (i32, i32) {
    %c0_i32 = arith.constant 0 : i32
    %c0_i32_0 = arith.constant 0 : i32
    %c0_i32_1 = arith.constant 0 : i32
    return %c0_i32, %c0_i32_0 : i32, i32
  }
  func.func @transform_9(%arg0: i32) -> (i32, i32) {
    %c0_i32 = arith.constant 0 : i32
    %c0_i32_0 = arith.constant 0 : i32
    %c0_i32_1 = arith.constant 0 : i32
    return %c0_i32, %c0_i32_0 : i32, i32
  }
  func.func @transform_10(%arg0: i32) -> (i32, i32) {
    %c0_i32 = arith.constant 0 : i32
    %c0_i32_0 = arith.constant 0 : i32
    return %arg0, %c0_i32 : i32, i32
  }
}

</mosaic_0001>

<bundles_post_ra>
// kernel: tpu_custom_call.1
= control target key start
LH: loop header
LB: loop body
LE: loop exit
PB: predicated region body
PF: predicated region fallthrough
CT: control target
= control target key end

     0   :  { %s1436_s15 = smov 0   ;;  %s1652_s0 = inlined_call_operand.vmem [shape: f32[64,16], index: 0, kind: input, shape index: {}]   ;;  %s1653_s1 = inlined_call_operand.vmem [shape: f32[16,256], index: 1, kind: input, shape index: {}]   ;;  %s1654_s2 = inlined_call_operand.vmem [shape: f32[256,32], index: 2, kind: input, shape index: {}]   ;;  %s1655_s3 = inlined_call_operand.vmem [shape: f32[16,32], index: 3, kind: input, shape index: {}]   ;;  %s1656_s4 = inlined_call_operand.vmem [shape: f32[16,32], index: 4, kind: input, shape index: {}]   ;;  %s1657_s5 = inlined_call_operand.vmem [shape: f32[1,32], index: 5, kind: input, shape index: {}]   ;;  %s1658_s6 = inlined_call_operand.vmem [shape: f32[2,32,32], index: 6, kind: input, shape index: {}]   ;;  %s1659_s7 = inlined_call_operand.vmem [shape: f32[2,1,32], index: 7, kind: input, shape index: {}]   ;;  %s1660_s8 = inlined_call_operand.vmem [shape: f32[1,32], index: 8, kind: input, shape index: {}]   ;;  %s1661_s9 = inlined_call_operand.<no memory space> [shape: f32[1,1], index: 9, kind: input, shape index: {}]   ;;  %s1662_s10 = inlined_call_operand.vmem [shape: f32[64,1], index: 10, kind: output, shape index: {}]  }
   0x1   :  { %v15_v0 = vstv %s1661_s9 }
   0x2   :  { %16 = vst [vmem:[#allocation2] sm:$0x1] %v15_v0 }
   0x3 LB: > { %s1131_s16 = sadd.s32 4294967295, %s1375_s15   ;;  %p1135_p0 = scmp.ge.s32.totalorder %s1375_s15, 1  ;;  %s1375_s15 = sphi %s1436_s15, %s22_s15  }
   0x4   : > { %p315_p1 = scmp.lt.s32.totalorder %s1375_s15, 3 }
   0x6   : > { %p316_p2 = pnand %p1135_p0, %p315_p1 }
   0x7   : > { %v374_v1 = vld [vmem:[%s1653_s1 + $0x8] sm:$0xff] (!%p316_p2)  ;;  %v376_v2 = vld [vmem:[%s1653_s1 + $0x18] sm:$0xff] (!%p316_p2)  ;;  %v373_v3 = vld [vmem:[%s1653_s1] sm:$0xff] (!%p316_p2)  ;;  %s1136_s22 = sshll.u32 (!%p316_p2), %s1131_s16, 2  ;;  %v1377_v6 = vmov (!%p316_p2), 0.0   ;;  %vm377_vm0 = vcmask (!%p316_p2), 130048  }
   0x8   : > { %319 = sbr.rel (%p316_p2) target bundleno = 1055 (0x41f), region = 60  ;;  %v1292_v4 = vpack.c.bf16 (!%p316_p2), %v376_v2, %v374_v1  ;;  %v375_v5 = vld [vmem:[%s1653_s1 + $0x10] sm:$0xff] (!%p316_p2)  ;;  %454 = vmatprep.mubr.f32.mxu0 (!%p316_p2), %v1377_v6  ;;  %p354_p3 = scmp.lt.s32.totalorder (!%p316_p2), %s1136_s22, 7  ;;  %v503_v7 = vld [vmem:[%s1654_s2 + $0x80] sm:$0xff] (!%p316_p2)  ;;  %v504_v8 = vld [vmem:[%s1654_s2 + $0x88] sm:$0xff] (!%p316_p2)  ;;  %vm820_vm1 = vcmask (!%p316_p2), 261120  }
   0x9   : > { %v1294_v9 = vpack.c.bf16 (!%p316_p2), %v375_v5, %v373_v3  ;;  %v1300_v10 = vpack.c.bf16 (!%p316_p2), %v504_v8, %v503_v7  ;;  %v487_v11 = vld [vmem:[%s1654_s2] sm:$0xff] (!%p316_p2)  ;;  %v488_v12 = vld [vmem:[%s1654_s2 + $0x8] sm:$0xff] (!%p316_p2)  ;;  %v505_v13 = vld [vmem:[%s1654_s2 + $0x90] sm:$0xff] (!%p316_p2)  ;;  %vm1070_vm2 = vcmask (!%p316_p2), 7168  }
   0xa   : > { %1293 = vmatprep.subr.bf16.mxu0 (!%p316_p2), %v1292_v4  ;;  %v506_v14 = vld [vmem:[%s1654_s2 + $0x98] sm:$0xff] (!%p316_p2)  ;;  %v1302_v15 = vpack.c.bf16 (!%p316_p2), %v488_v12, %v487_v11  ;;  %v489_v17 = vld [vmem:[%s1654_s2 + $0x10] sm:$0xff] (!%p316_p2)  ;;  %v507_v20 = vld [vmem:[%s1654_s2 + $0xa0] sm:$0xff] (!%p316_p2) }
   0xb   : > { %1295 = vmatpush1.bf16.msra.mxu0 (!%p316_p2), %v1294_v9  ;;  %v1304_v16 = vpack.c.bf16 (!%p316_p2), %v506_v14, %v505_v13  ;;  %v490_v18 = vld [vmem:[%s1654_s2 + $0x18] sm:$0xff] (!%p316_p2)  ;;  %v508_v21 = vld [vmem:[%s1654_s2 + $0xa8] sm:$0xff] (!%p316_p2)  ;;  %v519_v25 = vld [vmem:[%s1655_s3] sm:$0xff] (!%p316_p2) }
   0xc   : > { %1301 = vmatprep.subr.bf16.mxu0 (!%p316_p2), %v1300_v10  ;;  %v1306_v24 = vpack.c.bf16 (!%p316_p2), %v490_v18, %v489_v17  ;;  %v520_v26 = vld [vmem:[%s1655_s3 + $0x8] sm:$0xff] (!%p316_p2)  ;;  %v1308_v27 = vpack.c.bf16 (!%p316_p2), %v508_v21, %v507_v20  ;;  %v491_v28 = vld [vmem:[%s1654_s2 + $0x20] sm:$0xff] (!%p316_p2)  ;;  %v509_v31 = vld [vmem:[%s1654_s2 + $0xb0] sm:$0xff] (!%p316_p2) }
   0xd   : > { %v492_v29 = vld [vmem:[%s1654_s2 + $0x28] sm:$0xff] (!%p316_p2)  ;;  %v1296_v30 = vpack.c.bf16 (!%p316_p2), %v520_v26, %v519_v25  ;;  %v510_v32 = vld [vmem:[%s1654_s2 + $0xb8] sm:$0xff] (!%p316_p2)  ;;  %v493_v37 = vld [vmem:[%s1654_s2 + $0x30] sm:$0xff] (!%p316_p2) }
   0xe   : > { %v1310_v34 = vpack.c.bf16 (!%p316_p2), %v492_v29, %v491_v28  ;;  %v1312_v36 = vpack.c.bf16 (!%p316_p2), %v510_v32, %v509_v31  ;;  %v494_v38 = vld [vmem:[%s1654_s2 + $0x38] sm:$0xff] (!%p316_p2)  ;;  %v511_v40 = vld [vmem:[%s1654_s2 + $0xc0] sm:$0xff] (!%p316_p2)  ;;  %v512_v41 = vld [vmem:[%s1654_s2 + $0xc8] sm:$0xff] (!%p316_p2) }
   0xf   : > { %s1664_s22 = smov (!%p354_p3, %s1136_s22), 7  ;;  %1297 = vmatprep.subr.bf16.mxu1 %v1296_v30  ;;  %v1314_v43 = vpack.c.bf16 %v494_v38, %v493_v37  ;;  %v1316_v45 = vpack.c.bf16 %v512_v41, %v511_v40  ;;  %v495_v46 = vld [vmem:[%s1654_s2 + $0x40] sm:$0xff]  ;;  %v496_v47 = vld [vmem:[%s1654_s2 + $0x48] sm:$0xff]  ;;  %v513_v48 = vld [vmem:[%s1654_s2 + $0xd0] sm:$0xff] }
  0x10   : > { %s1137_s18 = sshll.u32 %s1664_s22, 3  ;;  %1299 = vmatpush3.bf16.msra.mxu1 %v1296_v30  ;;  %v514_v49 = vld [vmem:[%s1654_s2 + $0xd8] sm:$0xff]  ;;  %v1318_v50 = vpack.c.bf16 %v496_v47, %v495_v46  ;;  %v497_v52 = vld [vmem:[%s1654_s2 + $0x50] sm:$0xff]  ;;  %v515_v54 = vld [vmem:[%s1654_s2 + $0xe0] sm:$0xff] }
  0x11   : > { %s1482_s20 = scalar_lea.vmem %s1652_s0, %s1137_s18  ;;  %v1320_v51 = vpack.c.bf16 %v514_v49, %v513_v48  ;;  %v498_v53 = vld [vmem:[%s1654_s2 + $0x58] sm:$0xff]  ;;  %v516_v55 = vld [vmem:[%s1654_s2 + $0xe8] sm:$0xff]  ;;  %v499_v58 = vld [vmem:[%s1654_s2 + $0x60] sm:$0xff]  ;;  %s363_s9 = scalar_lea.vmem %s1662_s10, %s1137_s18 }
  0x12   : > { %v365_v19 = vld [vmem:[%s1482_s20] sm:$0xff]  ;;  %v1499_v23 = vld [vmem:[%s1482_s20 + $0x8] sm:$0xff]  ;;  %v367_v33 = vld [vmem:[%s1482_s20 + $0x10] sm:$0xff]  ;;  %v1322_v56 = vpack.c.bf16 %v498_v53, %v497_v52  ;;  %v1324_v57 = vpack.c.bf16 %v516_v55, %v515_v54 }
  0x13   : > { %1140 = vmatmul.mubr.msk.f32.vlgmr.msra.gmra.mrb[0].mxu0 %vm377_vm0, %v365_v19  ;;  %v369_v22 = vmul.f32 %v365_v19, %v365_v19  ;;  %v370_v35 = vmul.f32 %v1499_v23, %v1499_v23  ;;  %v371_v39 = vmul.f32 %v367_v33, %v367_v33  ;;  %v368_v42 = vld [vmem:[%s1482_s20 + $0x18] sm:$0xff]  ;;  %v500_v59 = vld [vmem:[%s1654_s2 + $0x68] sm:$0xff]  ;;  %v517_v61 = vld [vmem:[%s1654_s2 + $0xf0] sm:$0xff] }
  0x14   : > { %460 = vmatprep.mubr.f32.mxu0 %v1377_v6  ;;  %1303 = vmatpush3.bf16.msra.mxu0 %v1302_v15  ;;  %v372_v44 = vmul.f32 %v368_v42, %v368_v42  ;;  %v1326_v60 = vpack.c.bf16 %v500_v59, %v499_v58  ;;  %v518_v62 = vld [vmem:[%s1654_s2 + $0xf8] sm:$0xff]  ;;  %v703_v63 = vld [vmem:[%s1656_s4] sm:$0xff]  ;;  %v704_v1 = vld [vmem:[%s1656_s4 + $0x8] sm:$0xff] }
  0x15   : > { %1305 = vmatprep.subr.bf16.mxu0 %v1304_v16  ;;  %1248 = vmatprep.mubr.msk.f32.mxu1 %vm377_vm0, %v369_v22  ;;  %v1328_v0 = vpack.c.bf16 %v518_v62, %v517_v61  ;;  %v501_v2 = vld [vmem:[%s1654_s2 + $0x70] sm:$0xff]  ;;  %v502_v3 = vld [vmem:[%s1654_s2 + $0x78] sm:$0xff]  ;;  %v1332_v4 = vpack.c.bf16 %v704_v1, %v703_v63  ;;  %v810_v25 = vld [vmem:[%s1658_s6 + $0x8] sm:$0xff] }
  0x16   : > { %1249 = vmatmul.mubr.msk.f32.vlgmr.msra.gmra.mrb[0].mxu1 %vm377_vm0, %v370_v35  ;;  %v1330_v5 = vpack.c.bf16 %v502_v3, %v501_v2  ;;  %v811_v29 = vld [vmem:[%s1658_s6 + $0x10] sm:$0xff]  ;;  %v812_v30 = vld [vmem:[%s1658_s6 + $0x18] sm:$0xff]  ;;  %v1158_v32 = vld [vmem:[%s1658_s6 + $0x20] sm:$0xff] }
  0x17   : > { %1141 = vmatmul.mubr.msk.f32.gmra.mrb[2].mxu0 %vm377_vm0, %v1499_v23  ;;  %1251 = vmatprep.mubr.msk.f32.mxu1 %vm377_vm0, %v371_v39  ;;  %v1340_v31 = vpack.c.bf16 %v812_v30, %v811_v29  ;;  %v1152_v38 = vld [vmem:[%s1657_s5] ss:$0 sm:$0xff]  ;;  %v1161_v61 = vld [vmem:[%s1658_s6 + $0x38] sm:$0xff] }
  0x18   : > { %466 = vmatprep.mubr.f32.mxu0 %v1377_v6  ;;  %1307 = vmatpush3.bf16.msra.mxu0 %v1306_v24  ;;  %v809_v24 = vld [vmem:[%s1658_s6] sm:$0xff] }
  0x19   : > { %1309 = vmatprep.subr.bf16.mxu0 %v1308_v27  ;;  %1333 = vmatprep.subr.bf16.mxu1 %v1332_v4  ;;  %v1336_v26 = vpack.c.bf16 %v810_v25, %v809_v24  ;;  %v1153_v63 = vld [vmem:[%s1659_s7] ss:$0 sm:$0xff] }
  0x1a   : > { %1252 = vmatmul.mubr.msk.f32.gmra.mrb[2].mxu1 %vm377_vm0, %v372_v44 }
  0x1b   : > { %1142 = vmatmul.mubr.msk.f32.gmra.mrb[4].mxu0 %vm377_vm0, %v367_v33  ;;  %1258 = vmatprep.mubr.msk.f32.mxu1 %vm377_vm0, %v365_v19 }
  0x1c   : > { %472 = vmatprep.mubr.f32.mxu0 %v1377_v6  ;;  %1311 = vmatpush3.bf16.msra.mxu0 %v1310_v34 }
  0x1d   : > { %1313 = vmatprep.subr.bf16.mxu0 %v1312_v36  ;;  %1335 = vmatpush3.bf16.msra.mxu1 %v1332_v4 }
  0x1e   : > { %1337 = vmatprep.subr.bf16.mxu1 %v1336_v26 }
  0x1f   : > { %1143 = vmatmul.mubr.msk.f32.gmra.mrb[6].mxu0 %vm377_vm0, %v368_v42 }
  0x20   : > { %1315 = vmatpush3.bf16.msra.mxu0 %v1314_v43  ;;  %1259 = vmatmul.mubr.msk.f32.vlgmr.msra.gmra.mrb[0].mxu1 %vm377_vm0, %v1499_v23 }
  0x21   : > { %1317 = vmatprep.subr.bf16.mxu0 %v1316_v45  ;;  %1261 = vmatprep.mubr.msk.f32.mxu1 %vm377_vm0, %v367_v33  ;;  %v1159_v33 = vld [vmem:[%s1658_s6 + $0x28] sm:$0xff] }
  0x22   : > { %1339 = vmatpush3.bf16.msra.mxu1 %v1336_v26  ;;  %v1344_v34 = vpack.c.bf16 %v1159_v33, %v1158_v32 }
  0x23   : > { %1341 = vmatprep.subr.bf16.mxu1 %v1340_v31 }
  0x24   : > { %1319 = vmatpush3.bf16.msra.mxu0 %v1318_v50  ;;  %1262 = vmatmul.mubr.msk.f32.gmra.mrb[2].mxu1 %vm377_vm0, %v368_v42 }
  0x25   : > { %1321 = vmatprep.subr.bf16.mxu0 %v1320_v51 }
  0x26   : > { %1343 = vmatpush3.bf16.msra.mxu1 %v1340_v31 }
  0x27   : > { %1345 = vmatprep.subr.bf16.mxu1 %v1344_v34 }
  0x28   : > { %1323 = vmatpush3.bf16.msra.mxu0 %v1322_v56 }
  0x29   : > { %1325 = vmatprep.subr.bf16.mxu0 %v1324_v57 }
  0x2c   : > { %1327 = vmatpush3.bf16.msra.mxu0 %v1326_v60  ;;  %v1160_v60 = vld [vmem:[%s1658_s6 + $0x30] sm:$0xff] }
  0x2d   : > { %1329 = vmatprep.subr.bf16.mxu0 %v1328_v0  ;;  %v1348_v62 = vpack.c.bf16 %v1161_v61, %v1160_v60 }
  0x30   : > { %1331 = vmatpush3.bf16.msra.mxu0 %v1330_v5 }
  0xe6   : > { %v456_v6 = vpop.f32.mrb[0].mxu0 }
  0xe7   : > { %v458_v7 = vpop.f32.mrb[1].mxu0  ;;  %v479_v9 = vmul.f32 %v456_v6, %v456_v6 }
  0xe8   : > { %v480_v8 = vmul.f32 %v458_v7, %v458_v7 }
  0xea   : > { %v462_v10 = vpop.f32.mrb[2].mxu0  ;;  %682 = vmatprep.mubr.f32.mxu0 %v480_v8 }
  0xeb   : > { %v464_v11 = vpop.f32.mrb[3].mxu0  ;;  %683 = vmatmul.mubr.f32.vlgmr.msra.gmra.mrb[8].mxu0 %v479_v9  ;;  %v481_v13 = vmul.f32 %v462_v10, %v462_v10 }
  0xec   : > { %v482_v12 = vmul.f32 %v464_v11, %v464_v11 }
  0xee   : > { %v468_v14 = vpop.f32.mrb[4].mxu0  ;;  %687 = vmatprep.mubr.f32.mxu0 %v482_v12  ;;  %v1163_v12 = vld [vmem:[%s1659_s7 + $0x1] ss:$0 sm:$0xff] }
  0xef   : > { %v470_v15 = vpop.f32.mrb[5].mxu0  ;;  %688 = vmatmul.mubr.f32.gmra.mrb[10].mxu0 %v481_v13  ;;  %v483_v17 = vmul.f32 %v468_v14, %v468_v14 }
  0xf0   : > { %v484_v16 = vmul.f32 %v470_v15, %v470_v15 }
  0xf2   : > { %v474_v18 = vpop.f32.mrb[6].mxu0  ;;  %692 = vmatprep.mubr.f32.mxu0 %v484_v16 }
  0xf3   : > { %v476_v19 = vpop.f32.mrb[7].mxu0  ;;  %693 = vmatmul.mubr.f32.gmra.mrb[12].mxu0 %v483_v17  ;;  %v485_v21 = vmul.f32 %v474_v18, %v474_v18  ;;  %v1260_v22 = vpop.f32.mrb[0].mxu1  ;;  %v1168_v17 = vld [vmem:[%s1660_s8] ss:$0 sm:$0xff] }
  0xf4   : > { %v486_v20 = vmul.f32 %v476_v19, %v476_v19  ;;  %v771_v23 = vpop.f32.mrb[1].mxu1 }
  0xf6   : > { %697 = vmatprep.mubr.f32.mxu0 %v486_v20 }
  0xf7   : > { %698 = vmatmul.mubr.f32.gmra.mrb[14].mxu0 %v485_v21  ;;  %v1263_v27 = vpop.f32.mrb[2].mxu1 }
  0xf8   : > { %v781_v28 = vpop.f32.mrb[3].mxu1 }
 0x1be   : > { %v1210_v35 = vpop.f32.mrb[8].mxu0 }
 0x1bf   : > { %v1211_v36 = vpop.f32.mrb[9].mxu0 }
 0x1c0   : > { %v1212_v37 = vadd.f32 %v1211_v36, %v1210_v35 }
 0x1c2   : > { %v1353_v39 = vadd.f32 %v1212_v37, %v771_v23  ;;  %v1213_v40 = vpop.f32.mrb[10].mxu0 }
 0x1c3   : > { %v1214_v41 = vpop.f32.mrb[11].mxu0 }
 0x1c4   : > { %v801_v42 = vadd.f32 %v1353_v39, %v1152_v38  ;;  %v1215_v43 = vadd.f32 %v1214_v41, %v1213_v40 }
 0x1c6   : > { %v805_v44 = vmax.f32 %v801_v42, 0.0  ;;  %v1352_v45 = vadd.f32 %v1260_v22, %v1215_v43  ;;  %v1216_v46 = vpop.f32.mrb[12].mxu0 }
 0x1c7   : > { %v1217_v47 = vpop.f32.mrb[13].mxu0 }
 0x1c8   : > { %v802_v48 = vadd.f32 %v1352_v45, %v1152_v38  ;;  %v1218_v49 = vadd.f32 %v1217_v47, %v1216_v46  ;;  %1272 = vmatprep.mubr.msk.f32.mxu1 %vm820_vm1, %v805_v44 }
 0x1ca   : > { %v806_v50 = vmax.f32 %v802_v48, 0.0  ;;  %v1355_v51 = vadd.f32 %v1218_v49, %v781_v28  ;;  %v1219_v52 = vpop.f32.mrb[14].mxu0 }
 0x1cb   : > { %v1220_v53 = vpop.f32.mrb[15].mxu0 }
 0x1cc   : > { %v803_v54 = vadd.f32 %v1355_v51, %v1152_v38  ;;  %v1221_v55 = vadd.f32 %v1220_v53, %v1219_v52  ;;  %1273 = vmatmul.mubr.msk.f32.vlgmr.msra.gmra.mrb[4].mxu1 %vm820_vm1, %v806_v50 }
 0x1cd   : > { %1347 = vmatpush3.bf16.msra.mxu1 %v1344_v34  ;;  %v1169_v34 = vld [vmem:[#allocation2] ss:$0 sm:$0xff] }
 0x1ce   : > { %v807_v56 = vmax.f32 %v803_v54, 0.0  ;;  %v1354_v57 = vadd.f32 %v1263_v27, %v1221_v55  ;;  %1349 = vmatprep.subr.bf16.mxu1 %v1348_v62 }
 0x1d0   : > { %v804_v58 = vadd.f32 %v1354_v57, %v1152_v38  ;;  %1275 = vmatprep.mubr.msk.f32.mxu1 %vm820_vm1, %v807_v56 }
 0x1d1   : > { %1351 = vmatpush3.bf16.msra.mxu1 %v1348_v62 }
 0x1d2   : > { %v808_v59 = vmax.f32 %v804_v58, 0.0 }
 0x1d4   : > { %1276 = vmatmul.mubr.msk.f32.gmra.mrb[6].mxu1 %vm820_vm1, %v808_v59 }
 0x29f   : > { %v1274_v0 = vpop.f32.mrb[4].mxu1 }
 0x2a0   : > { %v905_v1 = vadd.f32 %v1274_v0, %v1153_v63  ;;  %v899_v2 = vpop.f32.mrb[5].mxu1 }
 0x2a1   : > { %v900_v3 = vadd.f32 %v1153_v63, %v899_v2 }
 0x2a2   : > { %v919_v5 = vmax.f32 %v905_v1, 0.0 }
 0x2a3   : > { %v918_v4 = vmax.f32 %v900_v3, 0.0 }
 0x2a5   : > { %1286 = vmatprep.mubr.msk.f32.mxu1 %vm820_vm1, %v918_v4 }
 0x2a6   : > { %1287 = vmatmul.mubr.msk.f32.vlgmr.msra.gmra.mrb[8].mxu1 %vm820_vm1, %v919_v5 }
 0x2a7   : > { %v1277_v6 = vpop.f32.mrb[6].mxu1 }
 0x2a8   : > { %v915_v7 = vadd.f32 %v1277_v6, %v1153_v63  ;;  %v909_v8 = vpop.f32.mrb[7].mxu1 }
 0x2a9   : > { %v910_v9 = vadd.f32 %v1153_v63, %v909_v8 }
 0x2aa   : > { %v921_v11 = vmax.f32 %v915_v7, 0.0 }
 0x2ab   : > { %v920_v10 = vmax.f32 %v910_v9, 0.0 }
 0x2ad   : > { %1289 = vmatprep.mubr.msk.f32.mxu1 %vm820_vm1, %v920_v10 }
 0x2ae   : > { %1290 = vmatmul.mubr.msk.f32.gmra.mrb[10].mxu1 %vm820_vm1, %v921_v11 }
 0x379   : > { %v1288_v13 = vpop.f32.mrb[8].mxu1 }
 0x37a   : > { %v1019_v14 = vadd.f32 %v1288_v13, %v1163_v12  ;;  %v1013_v15 = vpop.f32.mrb[9].mxu1 }
 0x37b   : > { %v1014_v16 = vadd.f32 %v1163_v12, %v1013_v15 }
 0x37c   : > { %v1033_v18 = vmax.f32 %v1019_v14, 0.0 }
 0x37d   : > { %v1032_v19 = vmax.f32 %v1014_v16, 0.0 }
 0x37e   : > { %v1044_v23 = vmul.f32 %v1168_v17, %v1033_v18 }
 0x37f   : > { %v1043_v20 = vmul.f32 %v1168_v17, %v1032_v19 }
 0x380   : > { %v1050_v29 = vsel %vm820_vm1, %v1044_v23, 0.0 }
 0x381   : > { %v1291_v21 = vpop.f32.mrb[10].mxu1  ;;  %v1047_v22 = vsel %vm820_vm1, %v1043_v20, 0.0 }
 0x382   : > { %v1029_v24 = vadd.f32 %v1291_v21, %v1163_v12  ;;  %1048 = vadd.xlane.f32.xlu0 %v1047_v22  ;;  %v1023_v25 = vpop.f32.mrb[11].mxu1 }
 0x383   : > { %v1024_v26 = vadd.f32 %v1163_v12, %v1023_v25 }
 0x384   : > { %v1035_v27 = vmax.f32 %v1029_v24, 0.0 }
 0x385   : > { %v1034_v28 = vmax.f32 %v1024_v26, 0.0 }
 0x386   : > { %1051 = vadd.xlane.f32.xlu0 %v1050_v29  ;;  %v1046_v32 = vmul.f32 %v1168_v17, %v1035_v27 }
 0x387   : > { %v1045_v30 = vmul.f32 %v1168_v17, %v1034_v28 }
 0x388   : > { %v1056_v33 = vsel %vm820_vm1, %v1046_v32, 0.0 }
 0x389   : > { %v1053_v31 = vsel %vm820_vm1, %v1045_v30, 0.0 }
 0x38a   : > { %1054 = vadd.xlane.f32.xlu1 %v1053_v31 }
 0x38e   : > { %1057 = vadd.xlane.f32.xlu1 %v1056_v33 }
 0x40f   : > { %v1049_v35 = vpop.xlane.xlu0 %1048 }
 0x410   : > { %v1066_v36 = vadd.f32 %v1169_v34, %v1049_v35 }
 0x412   : > { %1071 = vst.msk [vmem:[%s363_s9] sm:$0xff] %vm1070_vm2, %v1066_v36 }
 0x413   : > { %v1052_v37 = vpop.xlane.xlu0 %1051 }
 0x414   : > { %v1067_v38 = vadd.f32 %v1169_v34, %v1052_v37 }
 0x416   : > { %1072 = vst.msk [vmem:[%s363_s9 + $0x8] sm:$0xff] %vm1070_vm2, %v1067_v38 }
 0x417   : > { %v1055_v39 = vpop.xlane.xlu1 %1054 }
 0x418   : > { %v1068_v40 = vadd.f32 %v1169_v34, %v1055_v39 }
 0x41a   : > { %1073 = vst.msk [vmem:[%s363_s9 + $0x10] sm:$0xff] %vm1070_vm2, %v1068_v40 }
 0x41b   : > { %v1058_v41 = vpop.xlane.xlu1 %1057 }
 0x41c   : > { %v1069_v42 = vadd.f32 %v1169_v34, %v1058_v41 }
 0x41e   : > { %1074 = vst.msk [vmem:[%s363_s9 + $0x18] sm:$0xff] %vm1070_vm2, %v1069_v42 }
 0x41f PF: > { %s22_s15 = sadd.s32 1, %s1375_s15  }
 0x420   : > { %p19_p4 = scmp.ge.s32.totalorder %s22_s15, 4  }
 0x422   :  { %21 = sbr.rel (!%p19_p4) target bundleno = 3 (0x3), region = 92 }

</bundles_post_ra>
